<compile_context>
chip_gen: v6e
topology: v6e:2x2x1
jax: 0.10.0
libtpu: 0.0.40
codegen_flags: <defaults>
</compile_context>

<pallas_src>
import jax
import jax.numpy as jnp
from jax.experimental import pallas as pl
from jax.experimental.pallas import tpu as pltpu

# Module hyper-parameters (defaults of DB_GLU_block)
D_MODEL = 64          # d_model
DIM_FF = 128          # dim_feedforward
DIM_F = DIM_FF // 2   # dim_f == 64 (GLU half width; also linear2 input width)


def db_glu_kernel(x_ref, w1a_ref, w1b_ref, b1a_ref, b1b_ref, w2_ref, b2_ref, o_ref):
    """One row-tile per grid step.

    x_ref   : (TILE, D_MODEL)   VMEM
    w1a_ref : (D_MODEL, DIM_F)  VMEM  (first half of linear1.weight.T)
    w1b_ref : (D_MODEL, DIM_F)  VMEM  (second half of linear1.weight.T)
    b1a_ref : (1, DIM_F)        VMEM
    b1b_ref : (1, DIM_F)        VMEM
    w2_ref  : (DIM_F, D_MODEL)  VMEM  (linear2.weight.T)
    b2_ref  : (1, D_MODEL)      VMEM
    o_ref   : (TILE, D_MODEL)   VMEM
    """
    x = x_ref[...]                                                     # (TILE, D)

    # The two GLU branches of linear1 as two MXU dots (no in-kernel lane split).
    h1 = jnp.dot(x, w1a_ref[...], preferred_element_type=jnp.float32) + b1a_ref[...]
    h2 = jnp.dot(x, w1b_ref[...], preferred_element_type=jnp.float32) + b1b_ref[...]

    # merge_method='add':  x1*relu(x2) + x2*relu(x1)   (dropout p=0.0 -> identity)
    g = h1 * jnp.maximum(h2, 0.0) + h2 * jnp.maximum(h1, 0.0)

    # Output projection.
    out = jnp.dot(g, w2_ref[...], preferred_element_type=jnp.float32) + b2_ref[...]
    o_ref[...] = out.astype(o_ref.dtype)


def db_glu_forward(x, w1, b1, w2, b2, *, row_tile=256):
    """x: (..., D_MODEL). Weights in PyTorch layout:
       w1 (DIM_FF, D_MODEL), b1 (DIM_FF,), w2 (D_MODEL, DIM_F), b2 (D_MODEL,)."""
    *lead, d = x.shape
    assert d == D_MODEL
    n = 1
    for s in lead:
        n *= s
    x2d = x.reshape(n, d)

    def round_up(a, m):
        return ((a + m - 1) // m) * m

    # Batch many rows per grid step; pad row count to a multiple of the tile.
    tile = min(row_tile, round_up(n, 8))
    n_pad = round_up(n, tile)
    if n_pad != n:
        x2d = jnp.pad(x2d, ((0, n_pad - n), (0, 0)))

    # Trace-time weight prep (constants): transpose to x @ W layout and split
    # linear1 into the two GLU halves so the kernel never lane-slices a
    # 128-wide activation.
    w1t = w1.T                              # (D_MODEL, DIM_FF)
    w1a = w1t[:, :DIM_F]                    # (D_MODEL, DIM_F)
    w1b = w1t[:, DIM_F:]                    # (D_MODEL, DIM_F)
    b1a = b1[:DIM_F].reshape(1, DIM_F)
    b1b = b1[DIM_F:].reshape(1, DIM_F)
    w2t = w2.T                              # (DIM_F, D_MODEL)
    b2r = b2.reshape(1, D_MODEL)

    grid = (n_pad // tile,)
    out = pl.pallas_call(
        db_glu_kernel,
        out_shape=jax.ShapeDtypeStruct((n_pad, D_MODEL), x.dtype),
        grid_spec=pltpu.PrefetchScalarGridSpec(
            num_scalar_prefetch=0,
            grid=grid,
            in_specs=[
                pl.BlockSpec((tile, D_MODEL), lambda i: (i, 0)),
                pl.BlockSpec((D_MODEL, DIM_F), lambda i: (0, 0)),
                pl.BlockSpec((D_MODEL, DIM_F), lambda i: (0, 0)),
                pl.BlockSpec((1, DIM_F), lambda i: (0, 0)),
                pl.BlockSpec((1, DIM_F), lambda i: (0, 0)),
                pl.BlockSpec((DIM_F, D_MODEL), lambda i: (0, 0)),
                pl.BlockSpec((1, D_MODEL), lambda i: (0, 0)),
            ],
            out_specs=pl.BlockSpec((tile, D_MODEL), lambda i: (i, 0)),
        ),
        compiler_params=pltpu.CompilerParams(
            dimension_semantics=("parallel",)),
    )(x2d, w1a, w1b, b1a, b1b, w2t, b2r)

    return out[:n].reshape(*lead, D_MODEL)


def db_glu_reference(x, w1, b1, w2, b2):
    """Pure-JAX mirror of the PyTorch forward (merge='add', relu, dropout=0)."""
    h = x @ w1.T + b1
    x1, x2 = h[..., :DIM_F], h[..., DIM_F:]
    g = x1 * jax.nn.relu(x2) + x2 * jax.nn.relu(x1)
    return g @ w2.T + b2


if __name__ == "__main__":
    key = jax.random.PRNGKey(0)
    kx, k1, k2, k3, k4 = jax.random.split(key, 5)

    B, P = 2, 8
    x = jax.random.normal(kx, (B, P, D_MODEL), dtype=jnp.float32)

    # Deterministic synthetic parameters in PyTorch layout:
    #   linear1.weight (DIM_FF, D_MODEL), linear1.bias (DIM_FF,)
    #   linear2.weight (D_MODEL, DIM_F),  linear2.bias (D_MODEL,)
    w1 = jax.random.normal(k1, (DIM_FF, D_MODEL), jnp.float32) / jnp.sqrt(D_MODEL)
    b1 = jax.random.normal(k2, (DIM_FF,), jnp.float32) * 0.1
    w2 = jax.random.normal(k3, (D_MODEL, DIM_F), jnp.float32) / jnp.sqrt(DIM_F)
    b2 = jax.random.normal(k4, (D_MODEL,), jnp.float32) * 0.1

    # TODO(synk): nn.Dropout with p > 0 is not implemented (default config has
    # p = 0.0, which is an identity); a nonzero-p training kernel would need
    # pltpu.prng_seed/prng_random_bits in-kernel.

    y = db_glu_forward(x, w1, b1, w2, b2)
    jax.block_until_ready(y)

    y_ref = db_glu_reference(x, w1, b1, w2, b2)
    assert y.shape == (B, P, D_MODEL)
    assert jnp.allclose(y, y_ref, atol=1e-3, rtol=1e-3), "mismatch vs reference"

    print("KERNEL_OK")
</pallas_src>

<mosaic_0001>
module attributes {stable_mosaic.version = 11 : i64} {
  func.func @db_glu_kernel(%arg0: i32, %arg1: memref<16x64xf32, #tpu.memory_space<vmem>>, %arg2: memref<64x64xf32, #tpu.memory_space<vmem>>, %arg3: memref<64x64xf32, #tpu.memory_space<vmem>>, %arg4: memref<1x64xf32, #tpu.memory_space<vmem>>, %arg5: memref<1x64xf32, #tpu.memory_space<vmem>>, %arg6: memref<64x64xf32, #tpu.memory_space<vmem>>, %arg7: memref<1x64xf32, #tpu.memory_space<vmem>>, %arg8: memref<16x64xf32, #tpu.memory_space<vmem>>) attributes {dimension_semantics = [#tpu.dimension_semantics<parallel>], iteration_bounds = array<i64: 1>, scalar_prefetch = 0 : i64, scratch_operands = 0 : i64, tpu.core_type = #tpu.core_type<tc>, window_params = [{transform_indices = @transform_0, window_bounds = array<i64: 16, 64>}, {pipeline_mode = #tpu.pipeline_mode<synchronous>, transform_indices = @transform_1, window_bounds = array<i64: 64, 64>}, {pipeline_mode = #tpu.pipeline_mode<synchronous>, transform_indices = @transform_2, window_bounds = array<i64: 64, 64>}, {pipeline_mode = #tpu.pipeline_mode<synchronous>, transform_indices = @transform_3, window_bounds = array<i64: 1, 64>}, {pipeline_mode = #tpu.pipeline_mode<synchronous>, transform_indices = @transform_4, window_bounds = array<i64: 1, 64>}, {pipeline_mode = #tpu.pipeline_mode<synchronous>, transform_indices = @transform_5, window_bounds = array<i64: 64, 64>}, {pipeline_mode = #tpu.pipeline_mode<synchronous>, transform_indices = @transform_6, window_bounds = array<i64: 1, 64>}, {transform_indices = @transform_7, window_bounds = array<i64: 16, 64>}]} {
    %c0 = arith.constant 0 : index
    %c0_0 = arith.constant 0 : index
    %0 = vector.load %arg1[%c0, %c0_0] : memref<16x64xf32, #tpu.memory_space<vmem>>, vector<16x64xf32>
    %c0_1 = arith.constant 0 : index
    %c0_2 = arith.constant 0 : index
    %1 = vector.load %arg2[%c0_1, %c0_2] : memref<64x64xf32, #tpu.memory_space<vmem>>, vector<64x64xf32>
    %cst = arith.constant dense<0.000000e+00> : vector<16x64xf32>
    %2 = tpu.matmul %0, %1, %cst {dimension_numbers = #tpu.dot_dimension_numbers<[1], [0], [0], [1], [0, 0, 1, 1], [], []>} : vector<16x64xf32>, vector<64x64xf32>, vector<16x64xf32> -> vector<16x64xf32>
    %c0_3 = arith.constant 0 : index
    %c0_4 = arith.constant 0 : index
    %3 = vector.load %arg4[%c0_3, %c0_4] : memref<1x64xf32, #tpu.memory_space<vmem>>, vector<1x64xf32>
    %4 = vector.broadcast %3 : vector<1x64xf32> to vector<16x64xf32>
    %5 = arith.addf %2, %4 : vector<16x64xf32>
    %c0_5 = arith.constant 0 : index
    %c0_6 = arith.constant 0 : index
    %6 = vector.load %arg3[%c0_5, %c0_6] : memref<64x64xf32, #tpu.memory_space<vmem>>, vector<64x64xf32>
    %cst_7 = arith.constant dense<0.000000e+00> : vector<16x64xf32>
    %7 = tpu.matmul %0, %6, %cst_7 {dimension_numbers = #tpu.dot_dimension_numbers<[1], [0], [0], [1], [0, 0, 1, 1], [], []>} : vector<16x64xf32>, vector<64x64xf32>, vector<16x64xf32> -> vector<16x64xf32>
    %c0_8 = arith.constant 0 : index
    %c0_9 = arith.constant 0 : index
    %8 = vector.load %arg5[%c0_8, %c0_9] : memref<1x64xf32, #tpu.memory_space<vmem>>, vector<1x64xf32>
    %9 = vector.broadcast %8 : vector<1x64xf32> to vector<16x64xf32>
    %10 = arith.addf %7, %9 : vector<16x64xf32>
    %cst_10 = arith.constant 0.000000e+00 : f32
    %11 = vector.broadcast %cst_10 : f32 to vector<16x64xf32>
    %12 = arith.maximumf %10, %11 : vector<16x64xf32>
    %13 = arith.mulf %5, %12 : vector<16x64xf32>
    %cst_11 = arith.constant 0.000000e+00 : f32
    %14 = vector.broadcast %cst_11 : f32 to vector<16x64xf32>
    %15 = arith.maximumf %5, %14 : vector<16x64xf32>
    %16 = arith.mulf %10, %15 : vector<16x64xf32>
    %17 = arith.addf %13, %16 : vector<16x64xf32>
    %c0_12 = arith.constant 0 : index
    %c0_13 = arith.constant 0 : index
    %18 = vector.load %arg6[%c0_12, %c0_13] : memref<64x64xf32, #tpu.memory_space<vmem>>, vector<64x64xf32>
    %cst_14 = arith.constant dense<0.000000e+00> : vector<16x64xf32>
    %19 = tpu.matmul %17, %18, %cst_14 {dimension_numbers = #tpu.dot_dimension_numbers<[1], [0], [0], [1], [0, 0, 1, 1], [], []>} : vector<16x64xf32>, vector<64x64xf32>, vector<16x64xf32> -> vector<16x64xf32>
    %c0_15 = arith.constant 0 : index
    %c0_16 = arith.constant 0 : index
    %20 = vector.load %arg7[%c0_15, %c0_16] : memref<1x64xf32, #tpu.memory_space<vmem>>, vector<1x64xf32>
    %21 = vector.broadcast %20 : vector<1x64xf32> to vector<16x64xf32>
    %22 = arith.addf %19, %21 : vector<16x64xf32>
    %c0_17 = arith.constant 0 : index
    %c0_18 = arith.constant 0 : index
    %23 = vector.load %arg8[%c0_17, %c0_18] : memref<16x64xf32, #tpu.memory_space<vmem>>, vector<16x64xf32>
    tpu.vector_store %arg8[%c0_17, %c0_18], %22 {strides = array<i32>} : memref<16x64xf32, #tpu.memory_space<vmem>>, vector<16x64xf32>,
    return
  }
  func.func @transform_0(%arg0: i32) -> (i32, i32) {
    %c0_i32 = arith.constant 0 : i32
    %c0_i32_0 = arith.constant 0 : i32
    return %arg0, %c0_i32 : i32, i32
  }
  func.func @transform_1(%arg0: i32) -> (i32, i32) {
    %c0_i32 = arith.constant 0 : i32
    %c0_i32_0 = arith.constant 0 : i32
    %c0_i32_1 = arith.constant 0 : i32
    return %c0_i32, %c0_i32_0 : i32, i32
  }
  func.func @transform_2(%arg0: i32) -> (i32, i32) {
    %c0_i32 = arith.constant 0 : i32
    %c0_i32_0 = arith.constant 0 : i32
    %c0_i32_1 = arith.constant 0 : i32
    return %c0_i32, %c0_i32_0 : i32, i32
  }
  func.func @transform_3(%arg0: i32) -> (i32, i32) {
    %c0_i32 = arith.constant 0 : i32
    %c0_i32_0 = arith.constant 0 : i32
    %c0_i32_1 = arith.constant 0 : i32
    return %c0_i32, %c0_i32_0 : i32, i32
  }
  func.func @transform_4(%arg0: i32) -> (i32, i32) {
    %c0_i32 = arith.constant 0 : i32
    %c0_i32_0 = arith.constant 0 : i32
    %c0_i32_1 = arith.constant 0 : i32
    return %c0_i32, %c0_i32_0 : i32, i32
  }
  func.func @transform_5(%arg0: i32) -> (i32, i32) {
    %c0_i32 = arith.constant 0 : i32
    %c0_i32_0 = arith.constant 0 : i32
    %c0_i32_1 = arith.constant 0 : i32
    return %c0_i32, %c0_i32_0 : i32, i32
  }
  func.func @transform_6(%arg0: i32) -> (i32, i32) {
    %c0_i32 = arith.constant 0 : i32
    %c0_i32_0 = arith.constant 0 : i32
    %c0_i32_1 = arith.constant 0 : i32
    return %c0_i32, %c0_i32_0 : i32, i32
  }
  func.func @transform_7(%arg0: i32) -> (i32, i32) {
    %c0_i32 = arith.constant 0 : i32
    %c0_i32_0 = arith.constant 0 : i32
    return %arg0, %c0_i32 : i32, i32
  }
}

</mosaic_0001>

<bundles_post_ra>
// kernel: tpu_custom_call.1
= control target key start
LH: loop header
LB: loop body
LE: loop exit
PB: predicated region body
PF: predicated region fallthrough
CT: control target
= control target key end

     0   :  { %12 = vsyncpa [#allocation3], 0  ;;  %s703_s0 = inlined_call_operand.hbm [shape: f32[16,64], index: 0, kind: input, shape index: {}]   ;;  %s704_s1 = inlined_call_operand.hbm [shape: f32[64,64], index: 1, kind: input, shape index: {}]   ;;  %s705_s2 = inlined_call_operand.hbm [shape: f32[64,64], index: 2, kind: input, shape index: {}]   ;;  %s706_s3 = inlined_call_operand.vmem [shape: f32[1,64], index: 3, kind: input, shape index: {}]   ;;  %s707_s4 = inlined_call_operand.vmem [shape: f32[1,64], index: 4, kind: input, shape index: {}]   ;;  %s708_s5 = inlined_call_operand.hbm [shape: f32[64,64], index: 5, kind: input, shape index: {}]   ;;  %s709_s6 = inlined_call_operand.vmem [shape: f32[1,64], index: 6, kind: input, shape index: {}]   ;;  %s710_s7 = inlined_call_operand.hbm [shape: f32[16,64], index: 7, kind: output, shape index: {}]  }
   0x1   :  { %13 = vsyncpa [#allocation6], 0 }
   0x2   :  { %14 = vsyncpa [#allocation9], 0 }
   0x3   :  { %15 = vsyncpa [#allocation4], 0  ;;  %s609_s24 = smov [#allocation5]   ;;  %s610_s26 = smov [#allocation2]  }
   0x4   :  { %s33_s25 = sshll.u32 %s609_s24, 4  ;;  %s21_s27 = sshll.u32 %s610_s26, 4  ;;  %s34_s25 = int_to_ptr.vmem [resolvable:$true] %s33_s25  ;;  %s22_s27 = int_to_ptr.vmem [resolvable:$true] %s21_s27 }
   0x5   :  { %s509_s28 = scalar_lea.vmem %s34_s25, 1024  ;;  %p514_p1 = scmp.lt.s32.totalorder %s34_s25, %s34_s25 }
   0x6   :  { %p510_p0 = scmp.ne.s32.totalorder %s34_s25, %s509_s28  ;;  %p515_p2 = scmp.lt.s32.totalorder %s509_s28, %s509_s28 }
   0x8   :  { %p516_p3 = por %p515_p2, %p514_p1 }
   0xa   :  { %p517_p4 = pnand %p516_p3, %p510_p0 }
   0xc   :  { %520 = shalt.err (!%p517_p4)
}
   0xd   :  { %s611_s29 = smov 128   ;;  %s612_s30 = smov 8  }
   0xe   :  { %39 = dma.hbm_to_vmem [thread:$0]  %s704_s1, 1024, %s34_s25, [#allocation6], %s611_s29, %s611_s29, %s612_s30  }
   0xf   :  { %s529_s10 = scalar_lea.vmem %s22_s27, 256  ;;  %p534_p6 = scmp.lt.s32.totalorder %s22_s27, %s22_s27 }
  0x10   :  { %p530_p5 = scmp.ne.s32.totalorder %s22_s27, %s529_s10  ;;  %p535_p7 = scmp.lt.s32.totalorder %s529_s10, %s529_s10 }
  0x12   :  { %p536_p8 = por %p535_p7, %p534_p6 }
  0x14   :  { %p537_p9 = pnand %p536_p8, %p530_p5 }
  0x16   :  { %540 = shalt.err (!%p537_p9)
}
  0x17   :  { %27 = dma.hbm_to_vmem [thread:$0]  %s703_s0, 256, %s22_s27, [#allocation3], %s611_s29, %s611_s29, %s612_s30  }
  0x18   :  { %s613_s13 = smov [#allocation7]   ;;  %s614_s15 = smov [#allocation8]  }
  0x19   :  { %s45_s14 = sshll.u32 %s613_s13, 4  ;;  %s61_s16 = sshll.u32 %s614_s15, 4  ;;  %s46_s14 = int_to_ptr.vmem [resolvable:$true] %s45_s14  ;;  %s62_s16 = int_to_ptr.vmem [resolvable:$true] %s61_s16 }
  0x1a   :  { %s549_s1 = scalar_lea.vmem %s46_s14, 1024  ;;  %p554_p11 = scmp.lt.s32.totalorder %s46_s14, %s46_s14 }
  0x1b   :  { %p550_p10 = scmp.ne.s32.totalorder %s46_s14, %s549_s1  ;;  %p555_p12 = scmp.lt.s32.totalorder %s549_s1, %s549_s1 }
  0x1d   :  { %p556_p13 = por %p555_p12, %p554_p11 }
  0x1f   :  { %p557_p0 = pnand %p556_p13, %p550_p10 }
  0x21   :  { %560 = shalt.err (!%p557_p0)
}
  0x22   :  { %51 = dma.hbm_to_vmem [thread:$0]  %s705_s2, 1024, %s46_s14, [#allocation6], %s611_s29, %s611_s29, %s612_s30  }
  0x23   :  { %s569_s0 = scalar_lea.vmem %s62_s16, 1024  ;;  %p574_p2 = scmp.lt.s32.totalorder %s62_s16, %s62_s16 }
  0x24   :  { %p570_p1 = scmp.ne.s32.totalorder %s62_s16, %s569_s0  ;;  %p575_p3 = scmp.lt.s32.totalorder %s569_s0, %s569_s0 }
  0x26   :  { %p576_p4 = por %p575_p3, %p574_p2 }
  0x28   :  { %p577_p5 = pnand %p576_p4, %p570_p1 }
  0x2a   :  { %580 = shalt.err (!%p577_p5)
}
  0x2b   :  { %67 = dma.hbm_to_vmem [thread:$0]  %s708_s5, 1024, %s62_s16, [#allocation9], %s611_s29, %s611_s29, %s612_s30  }
  0x2c   :  { %601 = dma.done.wait [#allocation3], 256  }
  0x2d   :  { %602 = vsyncadd [#allocation3], 4294967040 }
  0x2e   :  { %603 = dma.done.wait [#allocation6], 2048  }
  0x2f   :  { %604 = vsyncadd [#allocation6], 4294965248 }
  0x30   :  { %605 = dma.done.wait [#allocation9], 1024  }
  0x31   :  { %606 = vsyncadd [#allocation9], 4294966272  ;;  %v91_v0 = vld [vmem:[#allocation5 + $0x38] sm:$0xff]  ;;  %v90_v2 = vld [vmem:[#allocation5 + $0x30] sm:$0xff]  ;;  %vm99_vm0 = vcmask 523264   ;;  %s615_s23 = smov [#allocation10]  }
  0x32   :  { %v188_v1 = vld [vmem:[#allocation7 + $0x38] sm:$0xff]  ;;  %437 = vmatprep.subr.mxu0 %v91_v0  ;;  %v187_v3 = vld [vmem:[#allocation7 + $0x30] sm:$0xff]  ;;  %v89_v4 = vld [vmem:[#allocation5 + $0x28] sm:$0xff]  ;;  %s384_s24 = sshll.u32 %s615_s23, 4  ;;  %s385_s24 = int_to_ptr.vmem [resolvable:$true] %s384_s24 }
  0x33   :  { %456 = vmatprep.subr.mxu1 %v188_v1  ;;  %438 = vmatpush3.msra.mxu0 %v91_v0  ;;  %v186_v5 = vld [vmem:[#allocation7 + $0x28] sm:$0xff]  ;;  %v88_v6 = vld [vmem:[#allocation5 + $0x20] sm:$0xff]  ;;  %v87_v8 = vld [vmem:[#allocation5 + $0x18] sm:$0xff]  ;;  %s581_s25 = scalar_lea.vmem %s385_s24, 256  ;;  %p586_p7 = scmp.lt.s32.totalorder %s385_s24, %s385_s24 }
  0x34   :  { %457 = vmatpush3.msra.mxu1 %v188_v1  ;;  %439 = vmatprep.subr.mxu0 %v90_v2  ;;  %v185_v7 = vld [vmem:[#allocation7 + $0x20] sm:$0xff]  ;;  %v184_v9 = vld [vmem:[#allocation7 + $0x18] sm:$0xff]  ;;  %v86_v10 = vld [vmem:[#allocation5 + $0x10] sm:$0xff]  ;;  %p582_p6 = scmp.ne.s32.totalorder %s385_s24, %s581_s25  ;;  %p587_p8 = scmp.lt.s32.totalorder %s581_s25, %s581_s25 }
  0x35   :  { %458 = vmatprep.subr.mxu1 %v187_v3  ;;  %440 = vmatpush3.msra.mxu0 %v90_v2  ;;  %v183_v11 = vld [vmem:[#allocation7 + $0x10] sm:$0xff]  ;;  %v85_v12 = vld [vmem:[#allocation5 + $0x8] sm:$0xff]  ;;  %v84_v14 = vld [vmem:[#allocation5] sm:$0xff] }
  0x36   :  { %459 = vmatpush3.msra.mxu1 %v187_v3  ;;  %441 = vmatprep.subr.mxu0 %v89_v4  ;;  %v182_v13 = vld [vmem:[#allocation7 + $0x8] sm:$0xff]  ;;  %v181_v15 = vld [vmem:[#allocation7] sm:$0xff]  ;;  %v82_v16 = vld [vmem:[#allocation2] sm:$0xff]  ;;  %p588_p9 = por %p587_p8, %p586_p7 }
  0x37   :  { %460 = vmatprep.subr.mxu1 %v186_v5  ;;  %442 = vmatpush3.msra.mxu0 %v89_v4  ;;  %v83_v17 = vld [vmem:[#allocation2 + $0x8] sm:$0xff]  ;;  %v287_v19 = vld [vmem:[#allocation8 + $0x30] sm:$0xff]  ;;  %v286_v20 = vld [vmem:[#allocation8 + $0x28] sm:$0xff] }
  0x38   :  { %461 = vmatpush3.msra.mxu1 %v186_v5  ;;  %443 = vmatprep.subr.mxu0 %v88_v6  ;;  %v288_v18 = vld [vmem:[#allocation8 + $0x38] sm:$0xff]  ;;  %v285_v21 = vld [vmem:[#allocation8 + $0x20] sm:$0xff]  ;;  %v283_v23 = vld [vmem:[#allocation8 + $0x10] sm:$0xff]  ;;  %p589_p10 = pnand %p588_p9, %p582_p6 }
  0x39   :  { %462 = vmatprep.subr.mxu1 %v185_v7  ;;  %444 = vmatpush3.msra.mxu0 %v88_v6  ;;  %v284_v22 = vld [vmem:[#allocation8 + $0x18] sm:$0xff]  ;;  %v282_v24 = vld [vmem:[#allocation8 + $0x8] sm:$0xff]  ;;  %v281_v25 = vld [vmem:[#allocation8] sm:$0xff] }
  0x3a   :  { %463 = vmatpush3.msra.mxu1 %v185_v7  ;;  %445 = vmatprep.subr.mxu0 %v87_v8  ;;  %v398_v26 = vld [vmem:[%s706_s3] ss:$0 sm:$0xff] }
  0x3b   :  { %464 = vmatprep.subr.mxu1 %v184_v9  ;;  %446 = vmatpush3.msra.mxu0 %v87_v8  ;;  %v401_v27 = vld [vmem:[%s707_s4] ss:$0 sm:$0xff] }
  0x3c   :  { %465 = vmatpush3.msra.mxu1 %v184_v9  ;;  %447 = vmatprep.subr.mxu0 %v86_v10  ;;  %v404_v46 = vld [vmem:[%s709_s6] ss:$0 sm:$0xff] }
  0x3d   :  { %466 = vmatprep.subr.mxu1 %v183_v11  ;;  %448 = vmatpush3.msra.mxu0 %v86_v10 }
  0x3e   :  { %467 = vmatpush3.msra.mxu1 %v183_v11  ;;  %449 = vmatprep.subr.mxu0 %v85_v12 }
  0x3f   :  { %468 = vmatprep.subr.mxu1 %v182_v13  ;;  %450 = vmatpush3.msra.mxu0 %v85_v12 }
  0x40   :  { %469 = vmatpush3.msra.mxu1 %v182_v13  ;;  %451 = vmatprep.subr.mxu0 %v84_v14 }
  0x41   :  { %470 = vmatprep.subr.mxu1 %v181_v15  ;;  %452 = vmatpush3.msra.mxu0 %v84_v14 }
  0x42   :  { %453 = vmatprep.mubr.msk.f32.mxu0 %vm99_vm0, %v82_v16  ;;  %471 = vmatpush3.msra.mxu1 %v181_v15 }
  0x43   :  { %472 = vmatprep.mubr.msk.f32.mxu1 %vm99_vm0, %v82_v16  ;;  %454 = vmatmul.mubr.msk.f32.vlgmr.msra.gmra.mxu0 %vm99_vm0, %v83_v17 }
  0x44   :  { %473 = vmatmul.mubr.msk.f32.vlgmr.msra.gmra.mxu1 %vm99_vm0, %v83_v17  ;;  %475 = vmatprep.subr.mxu0 %v288_v18 }
  0x45   :  { %476 = vmatpush3.msra.mxu0 %v288_v18 }
  0x46   :  { %477 = vmatprep.subr.mxu0 %v287_v19 }
  0x47   :  { %478 = vmatpush3.msra.mxu0 %v287_v19 }
  0x48   :  { %479 = vmatprep.subr.mxu0 %v286_v20 }
  0x49   :  { %480 = vmatpush3.msra.mxu0 %v286_v20 }
  0x4a   :  { %481 = vmatprep.subr.mxu0 %v285_v21 }
  0x4b   :  { %482 = vmatpush3.msra.mxu0 %v285_v21 }
  0x4c   :  { %483 = vmatprep.subr.mxu0 %v284_v22 }
  0x4d   :  { %484 = vmatpush3.msra.mxu0 %v284_v22 }
  0x4e   :  { %485 = vmatprep.subr.mxu0 %v283_v23 }
  0x4f   :  { %486 = vmatpush3.msra.mxu0 %v283_v23 }
  0x50   :  { %487 = vmatprep.subr.mxu0 %v282_v24 }
  0x51   :  { %488 = vmatpush3.msra.mxu0 %v282_v24 }
  0x52   :  { %489 = vmatprep.subr.mxu0 %v281_v25 }
  0x53   :  { %490 = vmatpush3.msra.mxu0 %v281_v25 }
 0x103   :  { %v455_v28 = vpop.f32.mrf.mxu0 }
 0x104   :  { %v474_v29 = vpop.f32.mrf.mxu1  ;;  %v178_v30 = vadd.f32 %v455_v28, %v398_v26 }
 0x105   :  { %v268_v31 = vadd.f32 %v474_v29, %v401_v27  ;;  %v172_v32 = vpop.f32.mrf.mxu0 }
 0x106   :  { %v262_v33 = vpop.f32.mrf.mxu1  ;;  %v276_v34 = vmax.f32 %v178_v30, 0.0  ;;  %v173_v36 = vadd.f32 %v398_v26, %v172_v32 }
 0x107   :  { %v272_v35 = vmax.f32 %v268_v31, 0.0  ;;  %v263_v37 = vadd.f32 %v401_v27, %v262_v33 }
 0x108   :  { %v275_v38 = vmax.f32 %v173_v36, 0.0  ;;  %v278_v41 = vmul.f32 %v276_v34, %v268_v31 }
 0x109   :  { %v271_v39 = vmax.f32 %v263_v37, 0.0  ;;  %v274_v40 = vmul.f32 %v272_v35, %v178_v30 }
 0x10a   :  { %v277_v43 = vmul.f32 %v275_v38, %v263_v37 }
 0x10b   :  { %v273_v42 = vmul.f32 %v271_v39, %v173_v36  ;;  %v280_v45 = vadd.f32 %v278_v41, %v274_v40 }
 0x10d   :  { %v279_v44 = vadd.f32 %v277_v43, %v273_v42 }
 0x10f   :  { %491 = vmatprep.mubr.msk.f32.mxu0 %vm99_vm0, %v279_v44 }
 0x110   :  { %492 = vmatmul.mubr.msk.f32.vlgmr.msra.gmra.mxu0 %vm99_vm0, %v280_v45 }
 0x1d0   :  { %v493_v47 = vpop.f32.mrf.mxu0 }
 0x1d1   :  { %v374_v48 = vadd.f32 %v493_v47, %v404_v46 }
 0x1d2   :  { %v368_v49 = vpop.f32.mrf.mxu0 }
 0x1d3   :  { %378 = vst.msk [vmem:[#allocation10 + $0x8] sm:$0xff] %vm99_vm0, %v374_v48  ;;  %v369_v50 = vadd.f32 %v404_v46, %v368_v49 }
 0x1d5   :  { %377 = vst.msk [vmem:[#allocation10] sm:$0xff] %vm99_vm0, %v369_v50 }
 0x1d6   :  { %592 = shalt.err (!%p589_p10)
}
 0x1d7   :  { %390 = dma.vmem_to_hbm [thread:$0]  %s385_s24, 256, %s710_s7, [#allocation4], %s611_s29, %s611_s29, %s612_s30  }
 0x1d8   :  { %607 = dma.done.wait [#allocation4], 256  }
 0x1d9   :  { %608 = vsyncadd [#allocation4], 4294967040 }
 0x1da   :  { %394 = vsyncpa [#allocation3], 1 }
 0x1db   :  { %395 = vsyncpa [#allocation6], 1 }
 0x1dc   :  { %396 = vsyncpa [#allocation9], 1 }
 0x1dd   :  { %397 = vsyncpa [#allocation4], 1 }

</bundles_post_ra>
